<compile_context>
chip_gen: v5e
topology: v5e:2x2
jax: 0.10.0
libtpu: 0.0.40
codegen_flags: <defaults>
</compile_context>

<pallas_src>
import math

import jax
import jax.numpy as jnp
import numpy as np
from jax.experimental import pallas as pl
from jax.experimental.pallas import tpu as pltpu

# ---------------- configuration (small, consistent with the module) ----------------
BATCH = 2
SEQ = 16            # input_shape[0]
FEAT = 8            # input_shape[1]
EMB = 16            # emb_dim
POS_DIM = EMB       # positional-encoding width -> concat width = 2*EMB
D = EMB + POS_DIM   # attention model dim (32)
HEADS = 4
HEAD_DIM = D // HEADS
OUT = 5             # out_features
OUT_PAD = 128       # lane-dense padded output width
BS = BATCH * SEQ    # 32 folded rows
HID = 4 * EMB       # 64

# ---------------- packed-slab row offsets ----------------
# bf16 weight slab (WSLAB_ROWS, 128)
W1_R = 0                         # [0:8,   0:HID]   expand[0] weight
W2Q_R = 16                       # [16:80, 0:128]   fused expand[2]+in_proj (+wop in V)
WSLAB_ROWS = 80                  # multiple of 16 (bf16 sublane tile)

# f32 constant slab (CSLAB_ROWS, 128)
C_R = 0                          # [0:32,    0:128] fused per-row qkv constant
ABIAS_R = 32                     # [32:160,  0:32]  additive block-diag batch mask (x4 heads)
QMASK_R = 160                    # [160:288, 0:32]  block-diagonal head-selection mask for Q
WF_R = 288                       # [288:304, 0:128] final linear weight (padded lanes)
B1_R = 304                       # [304, 0:HID]     expand[0] bias
BOP_R = 305                      # [305, 0:EMB]     fused out_proj bias
BF_R = 306                       # [306, 0:128]     final linear bias (padded)
CSLAB_ROWS = 312                 # multiple of 8


# ---------------- Pallas kernel: the whole forward hot path ----------------
def basenet_kernel(x_ref, wslab_ref, cslab_ref, out_ref):
    # hoisted loads / static slab slices
    x = x_ref[...].astype(jnp.bfloat16)                            # (BS, FEAT)
    w1 = wslab_ref[W1_R:W1_R + FEAT, :HID]                         # (8, 64)   bf16
    w2q = wslab_ref[W2Q_R:W2Q_R + HID, :]                          # (64, 128) bf16
    c = cslab_ref[C_R:C_R + BS, :]                                 # (32, 128) f32
    abias = cslab_ref[ABIAS_R:ABIAS_R + HEADS * BS, :BS]           # (128, 32) f32
    qmask = cslab_ref[QMASK_R:QMASK_R + HEADS * BS, :D]            # (128, 32) f32
    wf = cslab_ref[WF_R:WF_R + EMB, :]                             # (16, 128) f32
    b1 = cslab_ref[B1_R:B1_R + 1, :HID]                            # (1, 64)   f32
    bop = cslab_ref[BOP_R:BOP_R + 1, :EMB]                         # (1, 16)   f32
    bf = cslab_ref[BF_R:BF_R + 1, :]                               # (1, 128)  f32

    # expand[0] + ReLU on the whole folded-batch slab
    h = jnp.dot(x, w1, preferred_element_type=jnp.float32) + b1
    h = jnp.maximum(h, 0.0).astype(jnp.bfloat16)                   # (BS, HID)

    # fused expand[2] + [emb || pos] concat + MHA in_proj (+ out_proj folded into V)
    qkv = jnp.dot(h, w2q, preferred_element_type=jnp.float32) + c  # (BS, 128)

    qf = qkv[:, :D]                                                # (32, 32) f32, scale pre-folded
    k = qkv[:, D:2 * D].astype(jnp.bfloat16)                       # (32, 32)
    vp = qkv[:, 2 * D:].astype(jnp.bfloat16)                       # (32, 64)  4 heads x 16 (wop-fused)

    # all-head scores in ONE MXU pass: block-diagonal Q (sublane-tiled + head mask)
    q_bd = (jnp.concatenate([qf] * HEADS, axis=0) * qmask).astype(jnp.bfloat16)  # (128, 32)
    s = jax.lax.dot_general(q_bd, k, (((1,), (1,)), ((), ())),
                            preferred_element_type=jnp.float32)    # (128, 32) per-head scores
    # single masked softmax (mask precomputed as additive 0 / -1e30 bias)
    s = s + abias
    s = s - jnp.max(s, axis=-1, keepdims=True)
    p = jnp.exp(s)
    p = p * pl.reciprocal(jnp.sum(p, axis=-1, keepdims=True), approx=True)
    p = p.astype(jnp.bfloat16)

    # per-head PV through the wop-fused V' blocks, accumulated into EMB lanes
    acc = jnp.zeros((BS, EMB), jnp.float32)
    for hh in range(HEADS):                                        # static unroll over 4 heads
        acc = acc + jnp.dot(p[hh * BS:(hh + 1) * BS, :],
                            vp[:, hh * EMB:(hh + 1) * EMB],
                            preferred_element_type=jnp.float32)
    proj = acc + bop                                               # (BS, EMB)

    # per-batch max over the sequence (no concatenate), ReLU, final linear in f32
    pooled = jnp.max(proj.reshape(BATCH, SEQ, EMB), axis=1)        # (BATCH, EMB)
    pooled = jnp.maximum(pooled, 0.0)
    out_ref[...] = jnp.dot(pooled, wf, preferred_element_type=jnp.float32) + bf


# ---------------- one-time parameter fusion / packing (pure numpy, hoisted) ----------------
def fuse_params(p):
    f = lambda a: np.asarray(a, dtype=np.float32)
    w1, b1 = f(p["w1"]), f(p["b1"])
    w2, b2 = f(p["w2"]), f(p["b2"])
    wqkv, bqkv = f(p["wqkv"]), f(p["bqkv"])
    wo, bo = f(p["wo"]), f(p["bo"])
    wp, bp = f(p["wp"]), f(p["bp"])
    wf, bf = f(p["wf"]), f(p["bf"])
    pos = f(p["pos"])

    scale = 1.0 / math.sqrt(HEAD_DIM)
    w2qkv = w2 @ wqkv[:EMB]                                             # (HID, 3D)
    c_all = np.tile(b2 @ wqkv[:EMB] + pos @ wqkv[EMB:] + bqkv, (BATCH, 1))   # (BS, 3D)
    wop = wo @ wp                                                       # (D, EMB)
    bop = bo @ wp + bp                                                  # (1, EMB)

    # fold wop into the V columns -> 4 head blocks of width EMB
    wv_f = np.concatenate(
        [w2qkv[:, 2 * D + h * HEAD_DIM:2 * D + (h + 1) * HEAD_DIM]
         @ wop[h * HEAD_DIM:(h + 1) * HEAD_DIM] for h in range(HEADS)], axis=1)     # (HID, 64)
    cv_f = np.concatenate(
        [c_all[:, 2 * D + h * HEAD_DIM:2 * D + (h + 1) * HEAD_DIM]
         @ wop[h * HEAD_DIM:(h + 1) * HEAD_DIM] for h in range(HEADS)], axis=1)     # (BS, 64)
    # fold the softmax scale into the Q columns (exact, f32)
    w2q = np.concatenate([w2qkv[:, :D] * scale, w2qkv[:, D:2 * D], wv_f], axis=1)   # (HID, 128)
    c = np.concatenate([c_all[:, :D] * scale, c_all[:, D:2 * D], cv_f], axis=1)     # (BS, 128)

    # block-diagonal head-selection mask for the tiled Q
    hrow = np.repeat(np.arange(HEADS), BS)                              # (128,)
    dcol = np.arange(D) // HEAD_DIM                                     # (32,)
    qmask = (hrow[:, None] == dcol[None, :]).astype(np.float32)         # (128, 32)

    # additive same-batch mask, tiled over the 4 head row-blocks
    tok = np.arange(BS) // SEQ
    same = tok[:, None] == tok[None, :]
    abias = np.where(np.tile(same, (HEADS, 1)), 0.0, -1e30).astype(np.float32)      # (128, 32)

    wslab = np.zeros((WSLAB_ROWS, 128), np.float32)
    wslab[W1_R:W1_R + FEAT, :HID] = w1
    wslab[W2Q_R:W2Q_R + HID, :] = w2q

    cslab = np.zeros((CSLAB_ROWS, 128), np.float32)
    cslab[C_R:C_R + BS, :] = c
    cslab[ABIAS_R:ABIAS_R + HEADS * BS, :BS] = abias
    cslab[QMASK_R:QMASK_R + HEADS * BS, :D] = qmask
    cslab[WF_R:WF_R + EMB, :OUT] = wf
    cslab[B1_R, :HID] = b1[0]
    cslab[BOP_R, :EMB] = bop[0]
    cslab[BF_R, :OUT] = bf[0]

    return jnp.asarray(wslab, dtype=jnp.bfloat16), jnp.asarray(cslab)


# ---------------- jitted per-call forward (no fusion work inside) ----------------
@jax.jit
def basenet_forward(x, wslab, cslab):
    x2d = x.reshape(BS, FEAT)
    vmem = pl.BlockSpec(memory_space=pltpu.MemorySpace.VMEM)
    y = pl.pallas_call(
        basenet_kernel,
        out_shape=jax.ShapeDtypeStruct((BATCH, OUT_PAD), jnp.float32),
        in_specs=[vmem, vmem, vmem],
        out_specs=vmem,
    )(x2d, wslab, cslab)
    return y[:, :OUT]


# ---------------- pure-JAX f32 reference (original, unfused architecture) ----------------
def basenet_reference(x, p):
    h = jnp.maximum(jnp.einsum("bsf,fe->bse", x, p["w1"]) + p["b1"], 0.0)
    e = jnp.einsum("bse,ef->bsf", h, p["w2"]) + p["b2"]
    pos = jnp.broadcast_to(p["pos"][None], (BATCH, SEQ, POS_DIM))
    xc = jnp.concatenate([e, pos], axis=2)
    qkv = jnp.einsum("bsd,de->bse", xc, p["wqkv"]) + p["bqkv"]
    q, k, v = qkv[..., :D], qkv[..., D:2 * D], qkv[..., 2 * D:]
    qh = q.reshape(BATCH, SEQ, HEADS, HEAD_DIM)
    kh = k.reshape(BATCH, SEQ, HEADS, HEAD_DIM)
    vh = v.reshape(BATCH, SEQ, HEADS, HEAD_DIM)
    s = jnp.einsum("bqhd,bkhd->bhqk", qh, kh) / math.sqrt(HEAD_DIM)
    a = jax.nn.softmax(s, axis=-1)
    o = jnp.einsum("bhqk,bkhd->bqhd", a, vh).reshape(BATCH, SEQ, D)
    o = jnp.einsum("bsd,de->bse", o, p["wo"]) + p["bo"]
    pr = jnp.einsum("bsd,de->bse", o, p["wp"]) + p["bp"]
    pooled = jnp.maximum(jnp.max(pr, axis=1), 0.0)
    return pooled @ p["wf"] + p["bf"]


# ---------------- deterministic parameter init ----------------
def make_params(key):
    def linear(key, fan_in, fan_out):
        k1, k2 = jax.random.split(key)
        bound = 1.0 / math.sqrt(fan_in)
        w = jax.random.uniform(k1, (fan_in, fan_out), jnp.float32, -bound, bound)  # (in, out)
        b = jax.random.uniform(k2, (1, fan_out), jnp.float32, -bound, bound)
        return w, b

    keys = jax.random.split(key, 6)
    w1, b1 = linear(keys[0], FEAT, 4 * EMB)
    w2, b2 = linear(keys[1], 4 * EMB, EMB)
    wqkv, bqkv = linear(keys[2], D, 3 * D)
    wo, bo = linear(keys[3], D, D)
    wp, bp = linear(keys[4], D, EMB)
    wf, bf = linear(keys[5], EMB, OUT)

    # sinusoidal positional encoding (SEQ, POS_DIM), deterministic
    posn = np.arange(SEQ, dtype=np.float32)[:, None]
    i = np.arange(POS_DIM, dtype=np.float32)[None, :]
    angle = posn / np.power(10000.0, (2.0 * np.floor(i / 2.0)) / POS_DIM)
    enc = np.zeros((SEQ, POS_DIM), dtype=np.float32)
    enc[:, 0::2] = np.sin(angle[:, 0::2])
    enc[:, 1::2] = np.cos(angle[:, 1::2])

    return {
        "pos": jnp.asarray(enc),
        "w1": w1, "b1": b1, "w2": w2, "b2": b2,
        "wqkv": wqkv, "bqkv": bqkv, "wo": wo, "bo": bo,
        "wp": wp, "bp": bp, "wf": wf, "bf": bf,
    }


if __name__ == "__main__":
    key = jax.random.PRNGKey(0)
    kx, kp = jax.random.split(key)
    x = jax.random.normal(kx, (BATCH, SEQ, FEAT), jnp.float32)
    params = make_params(kp)

    # one-time fusion / slab packing, hoisted out of the per-call path
    wslab, cslab = fuse_params(params)

    out = jax.block_until_ready(basenet_forward(x, wslab, cslab))
    ref = jax.block_until_ready(basenet_reference(x, params))

    # bf16 MXU operands + approx reciprocal in the kernel vs. an f32 reference.
    err = float(np.max(np.abs(np.asarray(out) - np.asarray(ref))))
    if not np.allclose(np.asarray(out), np.asarray(ref), atol=3e-2, rtol=3e-2):
        raise AssertionError(f"mismatch: max abs err {err}")

    print("KERNEL_OK")
</pallas_src>

<mosaic_0001>
module attributes {stable_mosaic.version = 11 : i64} {
  func.func @basenet_kernel(%arg0: memref<32x8xf32, #tpu.memory_space<vmem>>, %arg1: memref<80x128xbf16, #tpu.memory_space<vmem>>, %arg2: memref<312x128xf32, #tpu.memory_space<vmem>>, %arg3: memref<2x128xf32, #tpu.memory_space<vmem>>) attributes {dimension_semantics = [], scalar_prefetch = 0 : i64, scratch_operands = 0 : i64, tpu.core_type = #tpu.core_type<tc>} {
    %c0 = arith.constant 0 : index
    %c0_0 = arith.constant 0 : index
    %0 = vector.load %arg0[%c0, %c0_0] : memref<32x8xf32, #tpu.memory_space<vmem>>, vector<32x8xf32>
    %1 = arith.truncf %0 : vector<32x8xf32> to vector<32x8xbf16>
    %c0_1 = arith.constant 0 : index
    %c0_2 = arith.constant 0 : index
    %2 = vector.load %arg1[%c0_1, %c0_2] : memref<80x128xbf16, #tpu.memory_space<vmem>>, vector<8x64xbf16>
    %c16 = arith.constant 16 : index
    %c0_3 = arith.constant 0 : index
    %3 = vector.load %arg1[%c16, %c0_3] : memref<80x128xbf16, #tpu.memory_space<vmem>>, vector<64x128xbf16>
    %c0_4 = arith.constant 0 : index
    %c0_5 = arith.constant 0 : index
    %4 = vector.load %arg2[%c0_4, %c0_5] : memref<312x128xf32, #tpu.memory_space<vmem>>, vector<32x128xf32>
    %c32 = arith.constant 32 : index
    %c0_6 = arith.constant 0 : index
    %5 = vector.load %arg2[%c32, %c0_6] : memref<312x128xf32, #tpu.memory_space<vmem>>, vector<128x32xf32>
    %c160 = arith.constant 160 : index
    %c0_7 = arith.constant 0 : index
    %6 = vector.load %arg2[%c160, %c0_7] : memref<312x128xf32, #tpu.memory_space<vmem>>, vector<128x32xf32>
    %c288 = arith.constant 288 : index
    %c0_8 = arith.constant 0 : index
    %7 = vector.load %arg2[%c288, %c0_8] : memref<312x128xf32, #tpu.memory_space<vmem>>, vector<16x128xf32>
    %c304 = arith.constant 304 : index
    %c0_9 = arith.constant 0 : index
    %8 = vector.load %arg2[%c304, %c0_9] : memref<312x128xf32, #tpu.memory_space<vmem>>, vector<1x64xf32>
    %c305 = arith.constant 305 : index
    %c0_10 = arith.constant 0 : index
    %9 = vector.load %arg2[%c305, %c0_10] : memref<312x128xf32, #tpu.memory_space<vmem>>, vector<1x16xf32>
    %c306 = arith.constant 306 : index
    %c0_11 = arith.constant 0 : index
    %10 = vector.load %arg2[%c306, %c0_11] : memref<312x128xf32, #tpu.memory_space<vmem>>, vector<1x128xf32>
    %cst = arith.constant dense<0.000000e+00> : vector<32x64xf32>
    %11 = tpu.matmul %1, %2, %cst {dimension_numbers = #tpu.dot_dimension_numbers<[1], [0], [0], [1], [0, 0, 1, 1], [], []>} : vector<32x8xbf16>, vector<8x64xbf16>, vector<32x64xf32> -> vector<32x64xf32>
    %12 = vector.broadcast %8 : vector<1x64xf32> to vector<32x64xf32>
    %13 = arith.addf %11, %12 : vector<32x64xf32>
    %cst_12 = arith.constant 0.000000e+00 : f32
    %14 = vector.broadcast %cst_12 : f32 to vector<32x64xf32>
    %15 = arith.maximumf %13, %14 : vector<32x64xf32>
    %16 = arith.truncf %15 : vector<32x64xf32> to vector<32x64xbf16>
    %cst_13 = arith.constant dense<0.000000e+00> : vector<32x128xf32>
    %17 = tpu.matmul %16, %3, %cst_13 {dimension_numbers = #tpu.dot_dimension_numbers<[1], [0], [0], [1], [0, 0, 1, 1], [], []>} : vector<32x64xbf16>, vector<64x128xbf16>, vector<32x128xf32> -> vector<32x128xf32>
    %18 = arith.addf %17, %4 : vector<32x128xf32>
    %19 = vector.extract_strided_slice %18 {offsets = [0, 0], sizes = [32, 32], strides = [1, 1]} : vector<32x128xf32> to vector<32x32xf32>
    %20 = vector.extract_strided_slice %18 {offsets = [0, 32], sizes = [32, 32], strides = [1, 1]} : vector<32x128xf32> to vector<32x32xf32>
    %21 = arith.truncf %20 : vector<32x32xf32> to vector<32x32xbf16>
    %22 = vector.extract_strided_slice %18 {offsets = [0, 64], sizes = [32, 64], strides = [1, 1]} : vector<32x128xf32> to vector<32x64xf32>
    %23 = arith.truncf %22 : vector<32x64xf32> to vector<32x64xbf16>
    %24 = tpu.concatenate %19, %19, %19, %19 in 0 : vector<32x32xf32>, vector<32x32xf32>, vector<32x32xf32>, vector<32x32xf32> -> vector<128x32xf32>
    %25 = arith.mulf %24, %6 : vector<128x32xf32>
    %26 = arith.truncf %25 : vector<128x32xf32> to vector<128x32xbf16>
    %cst_14 = arith.constant dense<0.000000e+00> : vector<128x32xf32>
    %27 = tpu.matmul %26, %21, %cst_14 {dimension_numbers = #tpu.dot_dimension_numbers<[1], [1], [0], [0], [0, 0, 1, 0], [], []>} : vector<128x32xbf16>, vector<32x32xbf16>, vector<128x32xf32> -> vector<128x32xf32>
    %28 = arith.addf %27, %5 : vector<128x32xf32>
    %cst_15 = arith.constant dense<0xFF800000> : vector<128xf32>
    %29 = vector.multi_reduction <maximumf>, %28, %cst_15 [1] : vector<128x32xf32> to vector<128xf32>
    %30 = vector.shape_cast %29 : vector<128xf32> to vector<128x1xf32>
    %31 = vector.broadcast %30 : vector<128x1xf32> to vector<128x32xf32>
    %32 = arith.subf %28, %31 : vector<128x32xf32>
    %33 = math.exp %32 : vector<128x32xf32>
    %cst_16 = arith.constant dense<0.000000e+00> : vector<128xf32>
    %34 = vector.multi_reduction <add>, %33, %cst_16 [1] : vector<128x32xf32> to vector<128xf32>
    %35 = vector.shape_cast %34 : vector<128xf32> to vector<128x1xf32>
    %36 = tpu.reciprocal %35 {approx = true} : vector<128x1xf32> -> vector<128x1xf32>
    %37 = vector.broadcast %36 : vector<128x1xf32> to vector<128x32xf32>
    %38 = arith.mulf %33, %37 : vector<128x32xf32>
    %39 = arith.truncf %38 : vector<128x32xf32> to vector<128x32xbf16>
    %cst_17 = arith.constant 0.000000e+00 : f32
    %40 = vector.broadcast %cst_17 : f32 to vector<32x16xf32>
    %41 = vector.extract_strided_slice %39 {offsets = [0, 0], sizes = [32, 32], strides = [1, 1]} : vector<128x32xbf16> to vector<32x32xbf16>
    %42 = vector.extract_strided_slice %23 {offsets = [0, 0], sizes = [32, 16], strides = [1, 1]} : vector<32x64xbf16> to vector<32x16xbf16>
    %cst_18 = arith.constant dense<0.000000e+00> : vector<32x16xf32>
    %43 = tpu.matmul %41, %42, %cst_18 {dimension_numbers = #tpu.dot_dimension_numbers<[1], [0], [0], [1], [0, 0, 1, 1], [], []>} : vector<32x32xbf16>, vector<32x16xbf16>, vector<32x16xf32> -> vector<32x16xf32>
    %44 = arith.addf %40, %43 : vector<32x16xf32>
    %45 = vector.extract_strided_slice %39 {offsets = [32, 0], sizes = [32, 32], strides = [1, 1]} : vector<128x32xbf16> to vector<32x32xbf16>
    %46 = vector.extract_strided_slice %23 {offsets = [0, 16], sizes = [32, 16], strides = [1, 1]} : vector<32x64xbf16> to vector<32x16xbf16>
    %cst_19 = arith.constant dense<0.000000e+00> : vector<32x16xf32>
    %47 = tpu.matmul %45, %46, %cst_19 {dimension_numbers = #tpu.dot_dimension_numbers<[1], [0], [0], [1], [0, 0, 1, 1], [], []>} : vector<32x32xbf16>, vector<32x16xbf16>, vector<32x16xf32> -> vector<32x16xf32>
    %48 = arith.addf %44, %47 : vector<32x16xf32>
    %49 = vector.extract_strided_slice %39 {offsets = [64, 0], sizes = [32, 32], strides = [1, 1]} : vector<128x32xbf16> to vector<32x32xbf16>
    %50 = vector.extract_strided_slice %23 {offsets = [0, 32], sizes = [32, 16], strides = [1, 1]} : vector<32x64xbf16> to vector<32x16xbf16>
    %cst_20 = arith.constant dense<0.000000e+00> : vector<32x16xf32>
    %51 = tpu.matmul %49, %50, %cst_20 {dimension_numbers = #tpu.dot_dimension_numbers<[1], [0], [0], [1], [0, 0, 1, 1], [], []>} : vector<32x32xbf16>, vector<32x16xbf16>, vector<32x16xf32> -> vector<32x16xf32>
    %52 = arith.addf %48, %51 : vector<32x16xf32>
    %53 = vector.extract_strided_slice %39 {offsets = [96, 0], sizes = [32, 32], strides = [1, 1]} : vector<128x32xbf16> to vector<32x32xbf16>
    %54 = vector.extract_strided_slice %23 {offsets = [0, 48], sizes = [32, 16], strides = [1, 1]} : vector<32x64xbf16> to vector<32x16xbf16>
    %cst_21 = arith.constant dense<0.000000e+00> : vector<32x16xf32>
    %55 = tpu.matmul %53, %54, %cst_21 {dimension_numbers = #tpu.dot_dimension_numbers<[1], [0], [0], [1], [0, 0, 1, 1], [], []>} : vector<32x32xbf16>, vector<32x16xbf16>, vector<32x16xf32> -> vector<32x16xf32>
    %56 = arith.addf %52, %55 : vector<32x16xf32>
    %57 = vector.broadcast %9 : vector<1x16xf32> to vector<32x16xf32>
    %58 = arith.addf %56, %57 : vector<32x16xf32>
    %59 = vector.shape_cast %58 : vector<32x16xf32> to vector<2x16x16xf32>
    %cst_22 = arith.constant dense<0xFF800000> : vector<2x16xf32>
    %60 = vector.multi_reduction <maximumf>, %59, %cst_22 [1] : vector<2x16x16xf32> to vector<2x16xf32>
    %cst_23 = arith.constant 0.000000e+00 : f32
    %61 = vector.broadcast %cst_23 : f32 to vector<2x16xf32>
    %62 = arith.maximumf %60, %61 : vector<2x16xf32>
    %cst_24 = arith.constant dense<0.000000e+00> : vector<2x128xf32>
    %63 = tpu.matmul %62, %7, %cst_24 {dimension_numbers = #tpu.dot_dimension_numbers<[1], [0], [0], [1], [0, 0, 1, 1], [], []>} : vector<2x16xf32>, vector<16x128xf32>, vector<2x128xf32> -> vector<2x128xf32>
    %64 = vector.broadcast %10 : vector<1x128xf32> to vector<2x128xf32>
    %65 = arith.addf %63, %64 : vector<2x128xf32>
    %c0_25 = arith.constant 0 : index
    %c0_26 = arith.constant 0 : index
    %66 = vector.load %arg3[%c0_25, %c0_26] : memref<2x128xf32, #tpu.memory_space<vmem>>, vector<2x128xf32>
    tpu.vector_store %arg3[%c0_25, %c0_26], %65 {strides = array<i32>} : memref<2x128xf32, #tpu.memory_space<vmem>>, vector<2x128xf32>,
    return
  }
}

</mosaic_0001>

<bundles_post_ra>
// kernel: basenet_forward.1
= control target key start
LH: loop header
LB: loop body
LE: loop exit
PB: predicated region body
PF: predicated region fallthrough
CT: control target
= control target key end

     0   :  { %8 = vsyncpa [#allocation3], 0  ;;  %s1225_s0 = inlined_call_operand.vmem [shape: f32[32,8], index: 0, kind: input, shape index: {}]   ;;  %s1226_s1 = inlined_call_operand.vmem [shape: bf16[80,128], index: 1, kind: input, shape index: {}]   ;;  %s1227_s2 = inlined_call_operand.hbm [shape: f32[312,128], index: 2, kind: input, shape index: {}]   ;;  %s1228_s3 = inlined_call_operand.hbm [shape: f32[2,128], index: 3, kind: output, shape index: {}]  }
   0x1   :  { %9 = vsyncpa [#allocation4], 0  ;;  %s18_s14 = sshll.u32 %s1227_s2, 4  ;;  %s910_s15 = smov [#allocation2]   ;;  %s19_s14 = int_to_ptr.hbm [resolvable:$true] %s18_s14 }
   0x2   :  { %s20_s16 = sshll.u32 %s910_s15, 4  ;;  %s911_s17 = smov 128   ;;  %s21_s16 = int_to_ptr.vmem [resolvable:$true] %s20_s16 }
   0x3   :  { %s912_s18 = smov 8  }
   0x4   :  { %26 = dma.hbm_to_vmem [thread:$0]  %s19_s14, 4992, %s21_s16, [#allocation3], %s911_s17, %s911_s17, %s912_s18  }
   0x5   :  { %906 = dma.done.wait [#allocation3], 4992  }
   0x6   :  { %907 = vsyncadd [#allocation3], 4294962304  ;;  %vm96_vm0 = vcmask 1043456   ;;  %v38_v0 = vld [vmem:[%s1226_s1] sm:$0xf]  ;;  %v33_v2 = vld [vmem:[%s1225_s0 + $0x8] sm:$0xff] }
   0x7   :  { %v32_v1 = vld [vmem:[%s1225_s0] sm:$0xff]  ;;  %v98_v3 = vsel %vm96_vm0, %v38_v0, 0  ;;  %v34_v5 = vld [vmem:[%s1225_s0 + $0x10] sm:$0xff]  ;;  %v35_v6 = vld [vmem:[%s1225_s0 + $0x18] sm:$0xff]  ;;  %vm89_vm1 = vcmask 64512   ;;  %vm149_vm2 = vcmask 523264  }
   0x8   :  { %v36_v4 = vpack.c.bf16 %v33_v2, %v32_v1  ;;  %107 = vmatpush.bf16.msra.mxu0 %v98_v3  ;;  %777 = vmatpush.bf16.msra.mxu1 %v98_v3  ;;  %v37_v7 = vpack.c.bf16 %v35_v6, %v34_v5  ;;  %v776_v8 = vld [vmem:[%s1226_s1 + $0x20] sm:$0xff]  ;;  %v775_v9 = vld [vmem:[%s1226_s1 + $0x18] sm:$0xff]  ;;  %v774_v10 = vld [vmem:[%s1226_s1 + $0x10] sm:$0xff]  ;;  %s914_s8 = smov 96   ;;  %s915_s9 = smov 32   ;;  %vm211_vm3 = vcmask 261120  }
   0x9   :  { %v773_v11 = vld [vmem:[%s1226_s1 + $0x8] sm:$0xff]  ;;  %v791_v13 = vld [vmem:[#allocation2 + $0x130] ss:$0 sm:$0xff]  ;;  %v47_v28 = vld [vmem:[#allocation2] sm:$0xff]  ;;  %s913_s1 = smov 48   ;;  %s916_s10 = smov 64  }
   0xa   :  { %v48_v30 = vld [vmem:[#allocation2 + $0x8] sm:$0xff]  ;;  %v67_v31 = vld [vmem:[#allocation2 + $0xa0] sm:$0xff]  ;;  %v49_v59 = vld [vmem:[#allocation2 + $0x10] sm:$0xff]  ;;  %s917_s11 = smov 16   ;;  %vm670_vm4 = vcmask 130048   ;;  %vm694_vm5 = vcmask 1041409  }
   0xb   :  { %736 = vmatmul.msk.bf16.vlgmr.msra.gmra.mxu0 %vm89_vm1, %v36_v4  ;;  %737 = vmatmul.msk.bf16.vlgmr.msra.gmra.mxu1 %vm89_vm1, %v37_v7  ;;  %v71_v32 = vld [vmem:[#allocation2 + $0xc0] sm:$0xff]  ;;  %v68_v34 = vld [vmem:[#allocation2 + $0xa8] sm:$0xff]  ;;  %v50_v61 = vld [vmem:[#allocation2 + $0x18] sm:$0xff]  ;;  %s918_s12 = smov [#allocation5]   ;;  %s726_s16 = sshll.u32 %s1228_s3, 4  ;;  %s727_s16 = int_to_ptr.hbm [resolvable:$true] %s726_s16 }
   0xc   :  { %160 = vmatpush.bf16.msrb.mxu1 %v776_v8  ;;  %v72_v35 = vld [vmem:[#allocation2 + $0xc8] sm:$0xff]  ;;  %v75_v36 = vld [vmem:[#allocation2 + $0xe0] sm:$0xff]  ;;  %v81_v62 = vld [vmem:[#allocation2 + $0x110] sm:$0xff]  ;;  %s724_s13 = sshll.u32 %s918_s12, 4  ;;  %s725_s13 = int_to_ptr.vmem [resolvable:$true] %s724_s13 }
   0xd   :  { %v76_v39 = vld [vmem:[#allocation2 + $0xe8] sm:$0xff]  ;;  %v79_v40 = vld [vmem:[#allocation2 + $0x100] sm:$0xff]  ;;  %v69_v63 = vld [vmem:[#allocation2 + $0xb0] sm:$0xff] }
   0xe   :  { %v80_v41 = vld [vmem:[#allocation2 + $0x108] sm:$0xff]  ;;  %v82_v1 = vld [vmem:[#allocation2 + $0x118] sm:$0xff]  ;;  %v73_v3 = vld [vmem:[#allocation2 + $0xd0] sm:$0xff] }
   0xf   :  { %v70_v2 = vld [vmem:[#allocation2 + $0xb8] sm:$0xff]  ;;  %v77_v7 = vld [vmem:[#allocation2 + $0xf0] sm:$0xff] }
  0x10   :  { %161 = vmatpush.bf16.msrb.mxu1 %v775_v9  ;;  %v74_v6 = vld [vmem:[#allocation2 + $0xd8] sm:$0xff] }
  0x11   :  { %v78_v8 = vld [vmem:[#allocation2 + $0xf8] sm:$0xff] }
  0x14   :  { %162 = vmatpush.bf16.msrb.mxu1 %v774_v10 }
  0x18   :  { %163 = vmatpush.bf16.msrb.mxu1 %v773_v11 }
  0x88   :  { %v109_v12 = vpop.f32.mrf.mxu0  ;;  %v114_v16 = vpop.f32.mrf.mxu1 }
  0x89   :  { %v110_v14 = vadd.f32 %v791_v13, %v109_v12  ;;  %v115_v22 = vadd.f32 %v791_v13, %v114_v16 }
  0x8b   :  { %v119_v18 = vmax.f32 %v110_v14, 0.0  ;;  %v121_v24 = vmax.f32 %v115_v22, 0.0 }
  0x90   :  { %v111_v15 = vpop.f32.mrf.mxu0  ;;  %v116_v21 = vpop.f32.mrf.mxu1 }
  0x91   :  { %v112_v17 = vadd.f32 %v791_v13, %v111_v15  ;;  %v117_v23 = vadd.f32 %v791_v13, %v116_v21 }
  0x93   :  { %v120_v19 = vmax.f32 %v112_v17, 0.0  ;;  %v122_v25 = vmax.f32 %v117_v23, 0.0 }
  0x95   :  { %v123_v20 = vpack.c.bf16 %v120_v19, %v119_v18  ;;  %v124_v26 = vpack.c.bf16 %v122_v25, %v121_v24 }
  0x97   :  { %754 = vmatmul.msk.bf16.vlgmr.msrb.gmra.mxu1 %vm149_vm2, %v123_v20 }
  0xa7   :  { %755 = vmatmul.msk.bf16.gmra.mxu1 %vm149_vm2, %v124_v26 }
 0x114   :  { %v165_v27 = vpop.f32.mrf.mxu1 }
 0x115   :  { %v969_v29 = vadd.f32 %v165_v27, %v47_v28 }
 0x117   :  { %v177_v38 = vpack.c.bf16 %v969_v29, %v969_v29  ;;  %v974_v42 = vmul.f32 %v969_v29, %v67_v31  ;;  %v979_v45 = vmul.f32 %v969_v29, %v71_v32  ;;  %v984_v47 = vmul.f32 %v969_v29, %v75_v36 }
 0x118   :  { %v989_v49 = vmul.f32 %v969_v29, %v79_v40 }
 0x119   :  { %v497_v51 = vunpack.c.l.b16 %v177_v38  ;;  %v55_v38 = vld [vmem:[#allocation2 + $0x40] sm:$0xff] }
 0x11c   :  { %v167_v33 = vpop.f32.mrf.mxu1 }
 0x11d   :  { %v168_v37 = vadd.f32 %v167_v33, %v48_v30 }
 0x11f   :  { %v178_v43 = vpack.c.bf16 %v168_v37, %v168_v37  ;;  %v976_v44 = vmul.f32 %v168_v37, %v68_v34  ;;  %v981_v46 = vmul.f32 %v168_v37, %v72_v35  ;;  %v986_v48 = vmul.f32 %v168_v37, %v76_v39  ;;  %v51_v34 = vld [vmem:[#allocation2 + $0x20] sm:$0xff]  ;;  %v65_v39 = vld [vmem:[#allocation2 + $0x90] sm:$0xff] }
 0x120   :  { %v991_v50 = vmul.f32 %v168_v37, %v80_v41  ;;  %v175_v26 = vpack.c.bf16 %v168_v37, %v969_v29 }
 0x121   :  { %v498_v52 = vunpack.c.l.b16 %v178_v43  ;;  %v197_v53 = vpack.c.bf16 %v976_v44, %v974_v42  ;;  %v199_v54 = vpack.c.bf16 %v981_v46, %v979_v45  ;;  %v201_v55 = vpack.c.bf16 %v986_v48, %v984_v47  ;;  %v52_v46 = vld [vmem:[#allocation2 + $0x28] sm:$0xff] }
 0x122   :  { %v203_v56 = vpack.c.bf16 %v991_v50, %v989_v49  ;;  %v66_v49 = vld [vmem:[#allocation2 + $0x98] sm:$0xff] }
 0x123   :  { %v1001_v57 = vpack.c.b16 %v498_v52, %v497_v51  ;;  %v53_v51 = vld [vmem:[#allocation2 + $0x30] sm:$0xff] }
 0x124   :  { %v170_v58 = vpop.f32.mrf.mxu1 }
 0x125   :  { %503 = vrot.lane.b32.xlu2 %v1001_v57, %s913_s1  ;;  %v171_v60 = vadd.f32 %v170_v58, %v49_v59  ;;  %v56_v58 = vld [vmem:[#allocation2 + $0x48] sm:$0xff] }
 0x127   :  { %v179_v5 = vpack.c.bf16 %v171_v60, %v171_v60  ;;  %v195_v9 = vmul.f32 %v171_v60, %v81_v62  ;;  %v183_v10 = vmul.f32 %v171_v60, %v69_v63  ;;  %v187_v15 = vmul.f32 %v171_v60, %v73_v3 }
 0x128   :  { %v191_v17 = vmul.f32 %v171_v60, %v77_v7 }
 0x129   :  { %v499_v19 = vunpack.c.l.b16 %v179_v5  ;;  %v58_v5 = vld [vmem:[#allocation2 + $0x58] sm:$0xff] }
 0x12c   :  { %v172_v0 = vpop.f32.mrf.mxu1 }
 0x12d   :  { %v173_v4 = vadd.f32 %v172_v0, %v50_v61  ;;  %v57_v61 = vld [vmem:[#allocation2 + $0x50] sm:$0xff] }
 0x12f   :  { %v176_v11 = vpack.c.bf16 %v173_v4, %v171_v60  ;;  %v180_v12 = vpack.c.bf16 %v173_v4, %v173_v4  ;;  %v196_v13 = vmul.f32 %v173_v4, %v82_v1  ;;  %v184_v14 = vmul.f32 %v173_v4, %v70_v2  ;;  %v54_v2 = vld [vmem:[#allocation2 + $0x38] sm:$0xff] }
 0x130   :  { %v188_v16 = vmul.f32 %v173_v4, %v74_v6  ;;  %v192_v18 = vmul.f32 %v173_v4, %v78_v8 }
 0x131   :  { %209 = vrot.lane.b32.xlu0 %v176_v11, %s914_s8  ;;  %v500_v20 = vunpack.c.l.b16 %v180_v12  ;;  %v204_v21 = vpack.c.bf16 %v196_v13, %v195_v9  ;;  %v198_v22 = vpack.c.bf16 %v184_v14, %v183_v10  ;;  %v59_v11 = vld [vmem:[#allocation2 + $0x60] sm:$0xff] }
 0x132   :  { %v200_v23 = vpack.c.bf16 %v188_v16, %v187_v15  ;;  %v202_v24 = vpack.c.bf16 %v192_v18, %v191_v17  ;;  %v60_v15 = vld [vmem:[#allocation2 + $0x68] sm:$0xff] }
 0x133   :  { %v1005_v25 = vpack.c.b16 %v500_v20, %v499_v19  ;;  %v61_v19 = vld [vmem:[#allocation2 + $0x70] sm:$0xff] }
 0x135   :  { %505 = vrot.lane.b32.xlu1 %v1005_v25, %s913_s1 }
 0x139   :  { %207 = vrot.lane.b32.xlu0 %v175_v26, %s914_s8 }
 0x141   :  { %587 = vrot.lane.b32.xlu0 %v1005_v25, %s915_s9 }
 0x17f   :  { %v504_v29 = vpop.permute.xlu2 %503 }
 0x1a3   :  { %v210_v27 = vpop.permute.xlu0 %209 }
 0x1a4   :  { %v240_v28 = vsel %vm211_vm3, %v210_v27, 0 }
 0x1a5   :  { %248 = vmatpush.bf16.xpose.msrb.mxu0 %v240_v28  ;;  %778 = vmatpush.bf16.xpose.msra.mxu2 %v240_v28 }
 0x1a6   :  { %779 = vmatpush.bf16.xpose.msra.mxu3 %v240_v28  ;;  %v63_v28 = vld [vmem:[#allocation2 + $0x80] sm:$0xff] }
 0x1a7   :  { %v506_v32 = vpop.permute.xlu1 %505 }
 0x1ab   :  { %v208_v30 = vpop.permute.xlu0 %207 }
 0x1ac   :  { %v237_v31 = vsel %vm211_vm3, %v208_v30, 0 }
 0x1ad   :  { %249 = vmatpush.bf16.xpose.msrb.mxu0 %v237_v31  ;;  %780 = vmatpush.bf16.xpose.msra.mxu2 %v237_v31 }
 0x1ae   :  { %781 = vmatpush.bf16.xpose.msra.mxu3 %v237_v31 }
 0x1b3   :  { %v588_v33 = vpop.permute.xlu0 %587 }
 0x1b4   :  { %756 = vmatmul.msk.bf16.vlgmr.msrb.gmra.mxu0 %vm211_vm3, %v197_v53  ;;  %758 = vmatmul.msk.bf16.vlgmr.msra.gmra.mxu2 %vm211_vm3, %v199_v54 }
 0x1b5   :  { %763 = vmatmul.msk.bf16.vlgmr.msra.gmra.mxu3 %vm211_vm3, %v204_v21 }
 0x1b6   :  { %521 = vmatpush.bf16.msrb.mxu3 %v506_v32 }
 0x1ba   :  { %522 = vmatpush.bf16.msrb.mxu3 %v504_v29  ;;  %v64_v29 = vld [vmem:[#allocation2 + $0x88] sm:$0xff] }
 0x1be   :  { %603 = vmatpush.bf16.msra.mxu3 %v588_v33 }
 0x1c4   :  { %757 = vmatmul.msk.bf16.gmra.mxu0 %vm211_vm3, %v198_v22  ;;  %759 = vmatmul.msk.bf16.gmra.mxu2 %vm211_vm3, %v200_v23  ;;  %v62_v23 = vld [vmem:[#allocation2 + $0x78] sm:$0xff] }
 0x1d4   :  { %760 = vmatmul.msk.bf16.gmra.mxu2 %vm211_vm3, %v201_v55 }
 0x1e4   :  { %761 = vmatmul.msk.bf16.gmra.mxu2 %vm211_vm3, %v202_v24 }
 0x1f4   :  { %762 = vmatmul.msk.bf16.gmra.mxu2 %vm211_vm3, %v203_v56 }
 0x231   :  { %v251_v35 = vpop.f32.mrf.mxu0 }
 0x232   :  { %v1028_v36 = vadd.f32 %v251_v35, %v51_v34 }
 0x234   :  { %v291_v37 = vsel %vm211_vm3, %v1028_v36, -inf }
 0x235   :  { %292 = vmax.xlane.f32.xlu2 %v291_v37 }
 0x237   :  { %v261_v40 = vpop.f32.mrf.mxu2 }
 0x238   :  { %v1032_v41 = vadd.f32 %v261_v40, %v55_v38  ;;  %v286_v42 = vpop.f32.mrf.mxu3 }
 0x239   :  { %v1034_v43 = vadd.f32 %v286_v42, %v65_v39  ;;  %v253_v44 = vpop.f32.mrf.mxu0 }
 0x23a   :  { %v303_v45 = vsel %vm211_vm3, %v1032_v41, -inf  ;;  %v1040_v48 = vadd.f32 %v253_v44, %v52_v46 }
 0x23b   :  { %304 = vmax.xlane.f32.xlu1 %v303_v45  ;;  %v333_v47 = vsel %vm211_vm3, %v1034_v43, -inf }
 0x23c   :  { %v294_v56 = vsel %vm211_vm3, %v1040_v48, -inf }
 0x23d   :  { %334 = vmax.xlane.f32.xlu2 %v333_v47 }
 0x23f   :  { %v263_v50 = vpop.f32.mrf.mxu2 }
 0x240   :  { %v288_v52 = vpop.f32.mrf.mxu3  ;;  %v1052_v62 = vadd.f32 %v263_v50, %v56_v58 }
 0x241   :  { %v1042_v53 = vadd.f32 %v288_v52, %v66_v49  ;;  %v256_v54 = vpop.f32.mrf.mxu0 }
 0x242   :  { %v1044_v55 = vadd.f32 %v256_v54, %v53_v51  ;;  %v306_v1 = vsel %vm211_vm3, %v1052_v62, -inf }
 0x243   :  { %v336_v59 = vsel %vm211_vm3, %v1042_v53, -inf  ;;  %295 = vmax.xlane.f32.xlu1 %v294_v56 }
 0x244   :  { %337 = vmax.xlane.f32.xlu0 %v336_v59  ;;  %v297_v60 = vsel %vm211_vm3, %v1044_v55, -inf }
 0x245   :  { %298 = vmax.xlane.f32.xlu2 %v297_v60 }
 0x247   :  { %v266_v63 = vpop.f32.mrf.mxu2 }
 0x248   :  { %v1054_v0 = vadd.f32 %v266_v63, %v57_v61 }
 0x249   :  { %v258_v3 = vpop.f32.mrf.mxu0 }
 0x24a   :  { %v309_v4 = vsel %vm211_vm3, %v1054_v0, -inf  ;;  %v1060_v6 = vadd.f32 %v258_v3, %v54_v2 }
 0x24b   :  { %307 = vmax.xlane.f32.xlu1 %v306_v1 }
 0x24c   :  { %v300_v9 = vsel %vm211_vm3, %v1060_v6, -inf }
 0x24d   :  { %310 = vmax.xlane.f32.xlu2 %v309_v4 }
 0x24f   :  { %v268_v7 = vpop.f32.mrf.mxu2 }
 0x250   :  { %v1062_v8 = vadd.f32 %v268_v7, %v58_v5 }
 0x252   :  { %v312_v10 = vsel %vm211_vm3, %v1062_v8, -inf }
 0x253   :  { %301 = vmax.xlane.f32.xlu1 %v300_v9 }
 0x255   :  { %313 = vmax.xlane.f32.xlu2 %v312_v10 }
 0x257   :  { %v271_v12 = vpop.f32.mrf.mxu2 }
 0x258   :  { %v1068_v13 = vadd.f32 %v271_v12, %v59_v11 }
 0x25a   :  { %v315_v14 = vsel %vm211_vm3, %v1068_v13, -inf }
 0x25b   :  { %316 = vmax.xlane.f32.xlu0 %v315_v14 }
 0x25f   :  { %v273_v16 = vpop.f32.mrf.mxu2 }
 0x260   :  { %v1072_v17 = vadd.f32 %v273_v16, %v60_v15 }
 0x262   :  { %v318_v18 = vsel %vm211_vm3, %v1072_v17, -inf }
 0x263   :  { %319 = vmax.xlane.f32.xlu1 %v318_v18 }
 0x267   :  { %v276_v20 = vpop.f32.mrf.mxu2 }
 0x268   :  { %v1076_v21 = vadd.f32 %v276_v20, %v61_v19 }
 0x26a   :  { %v321_v22 = vsel %vm211_vm3, %v1076_v21, -inf }
 0x26b   :  { %322 = vmax.xlane.f32.xlu2 %v321_v22 }
 0x26f   :  { %v278_v24 = vpop.f32.mrf.mxu2 }
 0x270   :  { %v1080_v26 = vadd.f32 %v278_v24, %v62_v23 }
 0x272   :  { %v324_v27 = vsel %vm211_vm3, %v1080_v26, -inf }
 0x273   :  { %325 = vmax.xlane.f32.xlu1 %v324_v27 }
 0x277   :  { %v281_v30 = vpop.f32.mrf.mxu2 }
 0x278   :  { %v1084_v31 = vadd.f32 %v281_v30, %v63_v28 }
 0x27a   :  { %v327_v32 = vsel %vm211_vm3, %v1084_v31, -inf }
 0x27b   :  { %328 = vmax.xlane.f32.xlu2 %v327_v32 }
 0x27f   :  { %v283_v33 = vpop.f32.mrf.mxu2 }
 0x280   :  { %v1088_v34 = vadd.f32 %v283_v33, %v64_v29 }
 0x282   :  { %v330_v35 = vsel %vm211_vm3, %v1088_v34, -inf }
 0x283   :  { %331 = vmax.xlane.f32.xlu1 %v330_v35 }
 0x2a8   :  { %v293_v37 = vpop.xlane.xlu2 %292 }
 0x2a9   :  { %v339_v38 = vsub.f32 %v1028_v36, %v293_v37 }
 0x2ab   :  { %v355_v39 = vmul.f32 1.442695, %v339_v38 }
 0x2ad   :  { %794 = vpow2.f32 %v355_v39 }
 0x2ae   :  { %v305_v40 = vpop.xlane.xlu1 %304 }
 0x2af   :  { %v343_v42 = vsub.f32 %v1032_v41, %v305_v40 }
 0x2b0   :  { %v1094_v44 = vpop.xlane.xlu2 %334 }
 0x2b1   :  { %v363_v45 = vmul.f32 1.442695, %v343_v42  ;;  %v353_v42 = vsub.f32 %v1034_v43, %v1094_v44 }
 0x2b3   :  { %v1096_v46 = vpop.eup %794  ;;  %796 = vpow2.f32 %v363_v45 }
 0x2b4   :  { %v387_v47 = vsel %vm211_vm3, %v1096_v46, 0.0 }
 0x2b5   :  { %388 = vadd.xlane.f32.xlu1 %v387_v47 }
 0x2b6   :  { %v296_v49 = vpop.xlane.xlu1 %295 }
 0x2b7   :  { %v340_v50 = vsub.f32 %v1040_v48, %v296_v49  ;;  %v1113_v1 = vpop.xlane.xlu0 %337 }
 0x2b8   :  { %v1101_v51 = vpop.xlane.xlu2 %298  ;;  %v354_v44 = vsub.f32 %v1042_v53, %v1113_v1 }
 0x2b9   :  { %v1103_v36 = vpop.eup %796  ;;  %v357_v52 = vmul.f32 1.442695, %v340_v50 }
 0x2ba   :  { %v399_v41 = vsel %vm211_vm3, %v1103_v36, 0.0 }
 0x2bb   :  { %798 = vpow2.f32 %v357_v52  ;;  %400 = vadd.xlane.f32.xlu2 %v399_v41  ;;  %v385_v41 = vmul.f32 1.442695, %v354_v44 }
 0x2be   :  { %v308_v54 = vpop.xlane.xlu1 %307 }
 0x2bf   :  { %v344_v27 = vsub.f32 %v1052_v62, %v308_v54 }
 0x2c0   :  { %v311_v56 = vpop.xlane.xlu2 %310 }
 0x2c1   :  { %v1107_v58 = vpop.eup %798  ;;  %v345_v59 = vsub.f32 %v1054_v0, %v311_v56  ;;  %v365_v33 = vmul.f32 1.442695, %v344_v27 }
 0x2c2   :  { %v390_v60 = vsel %vm211_vm3, %v1107_v58, 0.0 }
 0x2c3   :  { %v367_v48 = vmul.f32 1.442695, %v345_v59  ;;  %391 = vadd.xlane.f32.xlu0 %v390_v60 }
 0x2c5   :  { %800 = vpow2.f32 %v367_v48  ;;  %v341_v48 = vsub.f32 %v1044_v55, %v1101_v51 }
 0x2c6   :  { %v302_v61 = vpop.xlane.xlu1 %301 }
 0x2c7   :  { %v342_v63 = vsub.f32 %v1060_v6, %v302_v61 }
 0x2c8   :  { %v314_v2 = vpop.xlane.xlu2 %313 }
 0x2c9   :  { %v361_v3 = vmul.f32 1.442695, %v342_v63  ;;  %v346_v5 = vsub.f32 %v1062_v8, %v314_v2  ;;  %v359_v63 = vmul.f32 1.442695, %v341_v48 }
 0x2cb   :  { %v1115_v4 = vpop.eup %800  ;;  %802 = vpow2.f32 %v361_v3  ;;  %v369_v7 = vmul.f32 1.442695, %v346_v5 }
 0x2cc   :  { %v405_v0 = vsel %vm211_vm3, %v1115_v4, 0.0 }
 0x2cd   :  { %406 = vadd.xlane.f32.xlu0 %v405_v0  ;;  %804 = vpow2.f32 %v369_v7 }
 0x2ce   :  { %585 = vrot.lane.b32.xlu1 %v1001_v57, %s915_s9  ;;  %v317_v9 = vpop.xlane.xlu0 %316 }
 0x2cf   :  { %v347_v6 = vsub.f32 %v1068_v13, %v317_v9 }
 0x2d1   :  { %v1122_v10 = vpop.eup %802  ;;  %v371_v11 = vmul.f32 1.442695, %v347_v6 }
 0x2d2   :  { %v396_v8 = vsel %vm211_vm3, %v1122_v10, 0.0 }
 0x2d3   :  { %546 = vrot.lane.b32.xlu2 %v1005_v25, %s916_s10  ;;  %v1129_v12 = vpop.eup %804  ;;  %806 = vpow2.f32 %v371_v11 }
 0x2d4   :  { %v408_v14 = vsel %vm211_vm3, %v1129_v12, 0.0 }
 0x2d5   :  { %397 = vadd.xlane.f32.xlu0 %v396_v8 }
 0x2d6   :  { %544 = vrot.lane.b32.xlu1 %v1001_v57, %s916_s10  ;;  %v320_v20 = vpop.xlane.xlu1 %319 }
 0x2d7   :  { %v348_v23 = vsub.f32 %v1072_v17, %v320_v20 }
 0x2d9   :  { %v1134_v16 = vpop.eup %806 }
 0x2da   :  { %v411_v19 = vsel %vm211_vm3, %v1134_v16, 0.0 }
 0x2dd   :  { %409 = vadd.xlane.f32.xlu0 %v408_v14 }
 0x2de   :  { %v323_v15 = vpop.xlane.xlu2 %322 }
 0x2df   :  { %v349_v13 = vsub.f32 %v1076_v21, %v323_v15  ;;  %v373_v21 = vmul.f32 1.442695, %v348_v23 }
 0x2e1   :  { %v375_v18 = vmul.f32 1.442695, %v349_v13 }
 0x2e3   :  { %808 = vpow2.f32 %v375_v18 }
 0x2e4   :  { %810 = vpow2.f32 %v373_v21 }
 0x2e5   :  { %412 = vadd.xlane.f32.xlu0 %v411_v19 }
 0x2e6   :  { %v326_v28 = vpop.xlane.xlu1 %325 }
 0x2e7   :  { %v350_v35 = vsub.f32 %v1080_v26, %v326_v28 }
 0x2e9   :  { %v1138_v22 = vpop.eup %808  ;;  %v377_v37 = vmul.f32 1.442695, %v350_v35 }
 0x2ea   :  { %v417_v24 = vsel %vm211_vm3, %v1138_v22, 0.0  ;;  %v1147_v39 = vpop.eup %810 }
 0x2eb   :  { %v414_v26 = vsel %vm211_vm3, %v1147_v39, 0.0 }
 0x2ed   :  { %418 = vadd.xlane.f32.xlu0 %v417_v24 }
 0x2ee   :  { %v329_v30 = vpop.xlane.xlu2 %328 }
 0x2ef   :  { %v351_v32 = vsub.f32 %v1084_v31, %v329_v30 }
 0x2f1   :  { %v379_v29 = vmul.f32 1.442695, %v351_v32 }
 0x2f3   :  { %812 = vpow2.f32 %v379_v29 }
 0x2f4   :  { %814 = vpow2.f32 %v365_v33 }
 0x2f5   :  { %816 = vpow2.f32 %v377_v37 }
 0x2f6   :  { %v332_v17 = vpop.xlane.xlu1 %331 }
 0x2f7   :  { %v352_v38 = vsub.f32 %v1088_v34, %v332_v17  ;;  %v383_v34 = vmul.f32 1.442695, %v353_v42 }
 0x2f9   :  { %v1149_v40 = vpop.eup %812  ;;  %v381_v62 = vmul.f32 1.442695, %v352_v38 }
 0x2fa   :  { %v423_v31 = vsel %vm211_vm3, %v1149_v40, 0.0  ;;  %v1157_v45 = vpop.eup %814 }
 0x2fb   :  { %818 = vpow2.f32 %v381_v62  ;;  %424 = vadd.xlane.f32.xlu0 %v423_v31  ;;  %v402_v47 = vsel %vm211_vm3, %v1157_v45, 0.0  ;;  %v1161_v49 = vpop.eup %816 }
 0x2fc   :  { %415 = vadd.xlane.f32.xlu2 %v414_v26  ;;  %820 = vpow2.f32 %v383_v34  ;;  %v420_v52 = vsel %vm211_vm3, %v1161_v49, 0.0 }
 0x2fd   :  { %822 = vpow2.f32 %v385_v41 }
 0x300   :  { %403 = vadd.xlane.f32.xlu1 %v402_v47 }
 0x301   :  { %v1163_v43 = vpop.eup %818 }
 0x302   :  { %v426_v50 = vsel %vm211_vm3, %v1163_v43, 0.0  ;;  %v1171_v54 = vpop.eup %820 }
 0x303   :  { %427 = vadd.xlane.f32.xlu0 %v426_v50  ;;  %v429_v56 = vsel %vm211_vm3, %v1171_v54, 0.0  ;;  %v1175_v59 = vpop.eup %822 }
 0x304   :  { %421 = vadd.xlane.f32.xlu2 %v420_v52  ;;  %v432_v53 = vsel %vm211_vm3, %v1175_v59, 0.0 }
 0x30c   :  { %430 = vadd.xlane.f32.xlu2 %v429_v56 }
 0x314   :  { %433 = vadd.xlane.f32.xlu2 %v432_v53 }
 0x317   :  { %630 = vrot.lane.b32.xlu0 %v1001_v57, %s917_s11 }
 0x319   :  { %632 = vrot.lane.b32.xlu1 %v1005_v25, %s917_s11 }
 0x328   :  { %v389_v61 = vpop.xlane.xlu1 %388 }
 0x329   :  { %824 = vrcp.f32 %v389_v61 }
 0x32e   :  { %v401_v60 = vpop.xlane.xlu2 %400 }
 0x32f   :  { %v825_v3 = vpop.eup %824 }
 0x330   :  { %v451_v57 = vmul.f32 %v825_v3, %v1096_v46 }
 0x332   :  { %v467_v6 = vpack.c.bf16 %v451_v57, %v451_v57 }
 0x334   :  { %v538_v11 = vunpack.c.l.b16 %v467_v6 }
 0x336   :  { %v547_v1 = vpop.permute.xlu2 %546  ;;  %v392_v2 = vpop.xlane.xlu0 %391 }
 0x337   :  { %826 = vrcp.f32 %v392_v2  ;;  %562 = vmatpush.bf16.msra.mxu0 %v547_v1 }
 0x338   :  { %828 = vpow2.f32 %v359_v63 }
 0x339   :  { %830 = vrcp.f32 %v401_v60 }
 0x33d   :  { %v827_v5 = vpop.eup %826 }
 0x33e   :  { %v452_v0 = vmul.f32 %v827_v5, %v1107_v58  ;;  %v1184_v7 = vpop.eup %828 }
 0x33f   :  { %v393_v51 = vsel %vm211_vm3, %v1184_v7, 0.0  ;;  %v831_v24 = vpop.eup %830 }
 0x340   :  { %v586_v25 = vpop.permute.xlu1 %585  ;;  %v407_v9 = vpop.xlane.xlu0 %406  ;;  %v468_v55 = vpack.c.bf16 %v452_v0, %v452_v0  ;;  %v455_v27 = vmul.f32 %v831_v24, %v1103_v36 }
 0x341   :  { %604 = vmatpush.bf16.msra.mxu3 %v586_v25 }
 0x342   :  { %v539_v8 = vunpack.c.l.b16 %v468_v55  ;;  %v471_v32 = vpack.c.bf16 %v455_v27, %v455_v27 }
 0x343   :  { %394 = vadd.xlane.f32.xlu1 %v393_v51 }
 0x344   :  { %v542_v58 = vpack.c.b16 %v539_v8, %v538_v11  ;;  %v487_v35 = vunpack.c.l.b16 %v471_v32 }
 0x348   :  { %v545_v14 = vpop.permute.xlu1 %544  ;;  %v1189_v15 = vpop.xlane.xlu0 %397 }
 0x349   :  { %563 = vmatpush.bf16.msra.mxu0 %v545_v14 }
 0x34c   :  { %766 = vmatmul.msk.bf16.vlgmr.msra.gmra.mxu0 %vm211_vm3, %v542_v58 }
 0x350   :  { %v410_v13 = vpop.xlane.xlu0 %409 }
 0x358   :  { %v413_v46 = vpop.xlane.xlu0 %412 }
 0x360   :  { %v1192_v18 = vpop.xlane.xlu0 %418 }
 0x36e   :  { %v425_v19 = vpop.xlane.xlu0 %424 }
 0x36f   :  { %v416_v20 = vpop.xlane.xlu2 %415 }
 0x373   :  { %v404_v23 = vpop.xlane.xlu1 %403 }
 0x374   :  { %832 = vrcp.f32 %v404_v23 }
 0x375   :  { %834 = vrcp.f32 %v410_v13 }
 0x376   :  { %v428_v28 = vpop.xlane.xlu0 %427 }
 0x377   :  { %v422_v21 = vpop.xlane.xlu2 %421  ;;  %836 = vrcp.f32 %v428_v28 }
 0x378   :  { %838 = vrcp.f32 %v407_v9 }
 0x379   :  { %840 = vrcp.f32 %v425_v19 }
 0x37a   :  { %v833_v30 = vpop.eup %832  ;;  %842 = vrcp.f32 %v416_v20 }
 0x37b   :  { %v456_v29 = vmul.f32 %v833_v30, %v1157_v45  ;;  %v835_v38 = vpop.eup %834 }
 0x37c   :  { %v458_v34 = vmul.f32 %v835_v38, %v1129_v12 }
 0x37d   :  { %v472_v33 = vpack.c.bf16 %v456_v29, %v456_v29  ;;  %v837_v42 = vpop.eup %836 }
 0x37e   :  { %v839_v31 = vpop.eup %838  ;;  %v464_v26 = vmul.f32 %v837_v42, %v1163_v43  ;;  %v474_v52 = vpack.c.bf16 %v458_v34, %v458_v34 }
 0x37f   :  { %v488_v37 = vunpack.c.l.b16 %v472_v33  ;;  %v431_v17 = vpop.xlane.xlu2 %430  ;;  %v841_v36 = vpop.eup %840  ;;  %v457_v47 = vmul.f32 %v839_v31, %v1115_v4 }
 0x380   :  { %v463_v45 = vmul.f32 %v841_v36, %v1149_v40  ;;  %v480_v44 = vpack.c.bf16 %v464_v26, %v464_v26  ;;  %v490_v48 = vunpack.c.l.b16 %v474_v52  ;;  %v843_v40 = vpop.eup %842 }
 0x381   :  { %v491_v62 = vpack.c.b16 %v488_v37, %v487_v35  ;;  %v473_v53 = vpack.c.bf16 %v457_v47, %v457_v47  ;;  %v460_v5 = vmul.f32 %v843_v40, %v1147_v39 }
 0x382   :  { %v479_v41 = vpack.c.bf16 %v463_v45, %v463_v45  ;;  %v625_v60 = vunpack.c.l.b16 %v480_v44 }
 0x383   :  { %764 = vmatmul.msk.bf16.vlgmr.msrb.gmra.mxu3 %vm211_vm3, %v491_v62  ;;  %v489_v12 = vunpack.c.l.b16 %v473_v53  ;;  %v476_v9 = vpack.c.bf16 %v460_v5, %v460_v5  ;;  %v84_v62 = vld [vmem:[#allocation2 + $0x128] sm:$0xff] }
 0x384   :  { %v624_v43 = vunpack.c.l.b16 %v479_v41  ;;  %712 = vmatpush.msrb.mxu0 %v84_v62 }
 0x385   :  { %v492_v4 = vpack.c.b16 %v490_v48, %v489_v12  ;;  %v580_v8 = vunpack.c.l.b16 %v476_v9 }
 0x386   :  { %v628_v63 = vpack.c.b16 %v625_v60, %v624_v43 }
 0x387   :  { %v434_v50 = vpop.xlane.xlu2 %433 }
 0x388   :  { %844 = vrcp.f32 %v434_v50 }
 0x389   :  { %846 = vrcp.f32 %v413_v46  ;;  %v631_v61 = vpop.permute.xlu0 %630 }
 0x38a   :  { %848 = vrcp.f32 %v431_v17 }
 0x38b   :  { %v633_v56 = vpop.permute.xlu1 %632  ;;  %850 = vrcp.f32 %v422_v21 }
 0x38c   :  { %648 = vmatpush.bf16.msra.mxu1 %v633_v56  ;;  %852 = vrcp.f32 %v1192_v18  ;;  %v792_v56 = vld [vmem:[#allocation2 + $0x131] ss:$0 sm:$0xff] }
 0x38d   :  { %854 = vrcp.f32 %v1189_v15 }
 0x38e   :  { %v845_v1 = vpop.eup %844 }
 0x38f   :  { %v847_v2 = vpop.eup %846  ;;  %v466_v0 = vmul.f32 %v845_v1, %v1175_v59 }
 0x390   :  { %649 = vmatpush.bf16.msra.mxu1 %v631_v61  ;;  %v849_v3 = vpop.eup %848  ;;  %v459_v57 = vmul.f32 %v847_v2, %v1134_v16 }
 0x391   :  { %v465_v25 = vmul.f32 %v849_v3, %v1171_v54  ;;  %v482_v55 = vpack.c.bf16 %v466_v0, %v466_v0  ;;  %v851_v39 = vpop.eup %850 }
 0x392   :  { %v475_v51 = vpack.c.bf16 %v459_v57, %v459_v57  ;;  %v853_v16 = vpop.eup %852  ;;  %v462_v54 = vmul.f32 %v851_v39, %v1161_v49 }
 0x393   :  { %765 = vmatmul.msk.bf16.gmra.mxu3 %vm211_vm3, %v492_v4  ;;  %770 = vmatmul.msk.bf16.vlgmr.msra.gmra.mxu1 %vm211_vm3, %v628_v63  ;;  %v481_v6 = vpack.c.bf16 %v465_v25, %v465_v25  ;;  %v627_v11 = vunpack.c.l.b16 %v482_v55  ;;  %v461_v59 = vmul.f32 %v853_v16, %v1138_v22  ;;  %v855_v21 = vpop.eup %854 }
 0x394   :  { %v579_v14 = vunpack.c.l.b16 %v475_v51  ;;  %v478_v19 = vpack.c.bf16 %v462_v54, %v462_v54  ;;  %v454_v28 = vmul.f32 %v855_v21, %v1122_v10  ;;  %v83_v10 = vld [vmem:[#allocation2 + $0x120] sm:$0xff] }
 0x395   :  { %v626_v58 = vunpack.c.l.b16 %v481_v6  ;;  %v477_v20 = vpack.c.bf16 %v461_v59, %v461_v59  ;;  %713 = vmatpush.msrb.mxu0 %v83_v10 }
 0x396   :  { %v583_v13 = vpack.c.b16 %v580_v8, %v579_v14  ;;  %v582_v23 = vunpack.c.l.b16 %v478_v19  ;;  %v470_v49 = vpack.c.bf16 %v454_v28, %v454_v28  ;;  %v793_v28 = vld [vmem:[#allocation2 + $0x132] ss:$0 sm:$0xff] }
 0x397   :  { %v629_v46 = vpack.c.b16 %v627_v11, %v626_v58  ;;  %v581_v24 = vunpack.c.l.b16 %v477_v20 }
 0x398   :  { %v541_v33 = vunpack.c.l.b16 %v470_v49 }
 0x399   :  { %v584_v18 = vpack.c.b16 %v582_v23, %v581_v24 }
 0x3a3   :  { %768 = vmatmul.msk.bf16.vlgmr.msra.gmra.mxu3 %vm211_vm3, %v583_v13  ;;  %771 = vmatmul.msk.bf16.gmra.mxu1 %vm211_vm3, %v629_v46 }
 0x3b3   :  { %769 = vmatmul.msk.bf16.gmra.mxu3 %vm211_vm3, %v584_v18 }
 0x3b6   :  { %v395_v27 = vpop.xlane.xlu1 %394 }
 0x3b7   :  { %856 = vrcp.f32 %v395_v27 }
 0x3bd   :  { %v857_v30 = vpop.eup %856 }
 0x3be   :  { %v453_v32 = vmul.f32 %v857_v30, %v1184_v7 }
 0x3c0   :  { %v469_v29 = vpack.c.bf16 %v453_v32, %v453_v32 }
 0x3c2   :  { %v540_v22 = vunpack.c.l.b16 %v469_v29 }
 0x3c4   :  { %v543_v35 = vpack.c.b16 %v541_v33, %v540_v22 }
 0x3c6   :  { %767 = vmatmul.msk.bf16.gmra.mxu0 %vm211_vm3, %v543_v35 }
 0x3c9   :  { %v565_v42 = vpop.f32.mrf.mxu0 }
 0x3d1   :  { %v567_v26 = vpop.f32.mrf.mxu0 }
 0x406   :  { %v524_v37 = vpop.f32.mrf.mxu3 }
 0x407   :  { %v566_v45 = vadd.f32 %v565_v42, %v524_v37 }
 0x40e   :  { %v526_v15 = vpop.f32.mrf.mxu3 }
 0x40f   :  { %v568_v34 = vadd.f32 %v567_v26, %v526_v15 }
 0x410   :  { %v651_v36 = vpop.f32.mrf.mxu1 }
 0x416   :  { %v529_v17 = vpop.f32.mrf.mxu3 }
 0x418   :  { %v653_v50 = vpop.f32.mrf.mxu1 }
 0x41e   :  { %v531_v38 = vpop.f32.mrf.mxu3 }
 0x420   :  { %v656_v40 = vpop.f32.mrf.mxu1 }
 0x426   :  { %v606_v31 = vpop.f32.mrf.mxu3 }
 0x427   :  { %v616_v44 = vadd.f32 %v606_v31, %v566_v45 }
 0x428   :  { %v658_v9 = vpop.f32.mrf.mxu1 }
 0x429   :  { %v661_v41 = vadd.f32 %v651_v36, %v616_v44 }
 0x42b   :  { %v666_v60 = vadd.f32 %v792_v56, %v661_v41 }
 0x42d   :  { %v671_v63 = vsel %vm670_vm4, %v666_v60, -inf }
 0x42e   :  { %v608_v7 = vpop.f32.mrf.mxu3 }
 0x42f   :  { %v617_v47 = vadd.f32 %v608_v7, %v568_v34 }
 0x431   :  { %v662_v52 = vadd.f32 %v653_v50, %v617_v47 }
 0x433   :  { %v667_v53 = vadd.f32 %v792_v56, %v662_v52 }
 0x435   :  { %v672_v12 = vsel %vm670_vm4, %v667_v53, -inf }
 0x436   :  { %v611_v48 = vpop.f32.mrf.mxu3  ;;  %v673_v4 = vmax.f32 %v671_v63, %v672_v12 }
 0x438   :  { %v674_v3 = vrot.slane %v673_v4, 4 }
 0x43a   :  { %v675_v55 = vmax.f32 %v673_v4, %v674_v3 }
 0x43c   :  { %v676_v11 = vrot.slane %v675_v55, 2 }
 0x43e   :  { %v613_v57 = vpop.f32.mrf.mxu3  ;;  %v677_v46 = vmax.f32 %v675_v55, %v676_v11 }
 0x440   :  { %v678_v54 = vrot.slane %v677_v46, 1 }
 0x442   :  { %v679_v20 = vmax.f32 %v677_v46, %v678_v54 }
 0x443   :  { %v570_v43 = vpop.f32.mrf.mxu0 }
 0x444   :  { %v571_v61 = vadd.f32 %v570_v43, %v529_v17  ;;  %v689_v18 = vmax.f32 %v679_v20, 0.0 }
 0x446   :  { %v618_v1 = vadd.f32 %v611_v48, %v571_v61 }
 0x448   :  { %v663_v5 = vadd.f32 %v656_v40, %v618_v1 }
 0x44a   :  { %v668_v51 = vadd.f32 %v792_v56, %v663_v5 }
 0x44b   :  { %v572_v2 = vpop.f32.mrf.mxu0 }
 0x44c   :  { %v573_v0 = vadd.f32 %v572_v2, %v531_v38  ;;  %v680_v14 = vsel %vm670_vm4, %v668_v51, -inf }
 0x44e   :  { %v619_v25 = vadd.f32 %v613_v57, %v573_v0 }
 0x450   :  { %v664_v6 = vadd.f32 %v658_v9, %v619_v25 }
 0x452   :  { %v669_v8 = vadd.f32 %v792_v56, %v664_v6 }
 0x454   :  { %v681_v58 = vsel %vm670_vm4, %v669_v8, -inf }
 0x455   :  { %v682_v13 = vmax.f32 %v680_v14, %v681_v58 }
 0x457   :  { %v683_v39 = vrot.slane %v682_v13, 4 }
 0x459   :  { %v684_v16 = vmax.f32 %v682_v13, %v683_v39 }
 0x45b   :  { %v685_v59 = vrot.slane %v684_v16, 2 }
 0x45d   :  { %v686_v19 = vmax.f32 %v684_v16, %v685_v59 }
 0x45f   :  { %v687_v23 = vrot.slane %v686_v19, 1 }
 0x461   :  { %v688_v24 = vmax.f32 %v686_v19, %v687_v23 }
 0x463   :  { %v690_v27 = vmax.f32 %v688_v24, 0.0 }
 0x465   :  { %v695_v21 = vsel %vm694_vm5, %v690_v27, %v689_v18 }
 0x466   :  { %772 = vmatmul.msk.f32.vlgmr.msrb.gmra.mxu0 %vm670_vm4, %v695_v21 }
 0x4e3   :  { %v715_v30 = vpop.f32.mrf.mxu0 }
 0x4e4   :  { %v716_v32 = vadd.f32 %v793_v28, %v715_v30 }
 0x4e6   :  { %718 = vst [vmem:[#allocation5] sm:$0x3] %v716_v32 }
 0x4e7   :  { %729 = dma.vmem_to_hbm [thread:$0]  %s725_s13, 32, %s727_s16, [#allocation4]  }
 0x4e8   :  { %908 = dma.done.wait [#allocation4], 32  }
 0x4e9   :  { %909 = vsyncadd [#allocation4], 4294967264 }
 0x4ea   :  { %734 = vsyncpa [#allocation3], 1 }
 0x4eb   :  { %735 = vsyncpa [#allocation4], 1 }

</bundles_post_ra>
